<compile_context>
chip_gen: v7x
topology: tpu7x:2x2x1
jax: 0.10.0
libtpu: 0.0.40
codegen_flags: <defaults>
</compile_context>

<pallas_src>
import jax
import jax.numpy as jnp
from jax.experimental import pallas as pl
from jax.experimental.pallas import tpu as pltpu

EPS = 1e-5
LANE = 128
_MAX_TILE_ROWS = 4096          # safety rail; real cap is the byte-based VMEM budget


def _round_up(x, m):
    return -(-x // m) * m


def _prod(xs):
    r = 1
    for s in xs:
        r *= int(s)
    return r


def _sublane_pack(itemsize):
    # rows per vreg sublane-group: f32 -> 8, bf16 -> 16, int8/fp8 -> 32
    return {4: 8, 2: 16, 1: 32}.get(itemsize, 8)


def _vmem_limits():
    """Generation-aware VMEM limit / tile-sizing budget (v5e/v6e 128 MiB, v7x 64 MiB)."""
    cap = 128 * 1024 * 1024
    try:
        c = int(pltpu.get_tpu_info().vmem_capacity_bytes)
        if c >= (32 << 20):
            cap = c
    except Exception:
        pass
    limit = int(cap * 0.75)      # scoped-vmem limit passed to the compiler
    budget = int(cap * 0.50)     # tile-sizing budget (headroom under the limit)
    return limit, budget


# --------------------------------------------------------------------------
# feature probe: single-buffered (Buffered(1)) BlockSpecs for invariant inputs
# --------------------------------------------------------------------------
_BUFFERED1_OK = None


def _buffered1_supported():
    global _BUFFERED1_OK
    if _BUFFERED1_OK is not None:
        return _BUFFERED1_OK
    ok = False
    if hasattr(pl, "Buffered"):
        try:
            def _k(x_ref, o_ref):
                o_ref[...] = x_ref[...]

            f = pl.pallas_call(
                _k,
                out_shape=jax.ShapeDtypeStruct((8, LANE), jnp.float32),
                grid_spec=pltpu.PrefetchScalarGridSpec(
                    num_scalar_prefetch=0,
                    grid=(1,),
                    in_specs=[pl.BlockSpec((8, LANE), lambda i: (0, 0),
                                           pipeline_mode=pl.Buffered(1))],
                    out_specs=pl.BlockSpec((8, LANE), lambda i: (0, 0)),
                ),
            )
            jax.block_until_ready(f(jnp.zeros((8, LANE), jnp.float32)))
            ok = True
        except Exception:
            ok = False
    _BUFFERED1_OK = ok
    return ok


def _invariant_spec(shape, index_map):
    """BlockSpec for a grid-invariant input: single buffer when supported."""
    if _buffered1_supported():
        return pl.BlockSpec(shape, index_map, pipeline_mode=pl.Buffered(1))
    return pl.BlockSpec(shape, index_map)


def _choose_tile_rows(rows, per_row_bytes, budget, pack):
    """Largest sublane-packed row tile fitting the byte budget; keeps >=2 grid steps."""
    if rows <= pack:
        return rows
    budget = max(budget, 1 << 20)
    per_row_bytes = max(per_row_bytes, 1)
    t = max(pack, (budget // per_row_bytes) // pack * pack)
    t = min(t, _MAX_TILE_ROWS)
    # >=2 grid steps so the second TensorCore (v7x megacore) has work to shard;
    # costs ~0.35us extra on single-TC chips, negligible.
    half = _round_up(_round_up(rows, 2) // 2, pack)
    t = min(t, max(pack, half))
    t = min(t, _round_up(rows, pack))
    return int(t)


# --------------------------------------------------------------------------
# plain LayerNorm kernel (general `fn` path)
# --------------------------------------------------------------------------
def _make_ln_kernel(dim_valid, dim_pad):
    inv_n = 1.0 / float(dim_valid)
    need_mask = dim_valid != dim_pad

    def kernel(x_ref, g_ref, b_ref, o_ref):
        # TODO(synk): if a v7x bundle dump shows these row reductions are
        # XLU-bound at small dim, route the sums through the idle MXU instead.
        x = x_ref[...].astype(jnp.float32)
        if need_mask:
            col = jax.lax.broadcasted_iota(jnp.int32, x.shape, 1)
            m = (col < dim_valid).astype(jnp.float32)
            x = x * m
        mean = jnp.sum(x, axis=-1, keepdims=True) * inv_n
        xc = x - mean
        if need_mask:
            xc = xc * m
        var = jnp.sum(xc * xc, axis=-1, keepdims=True) * inv_n   # biased, like torch
        inv = jax.lax.rsqrt(var + EPS)
        scale = inv * g_ref[...].astype(jnp.float32)              # fold gamma into inv-std
        o_ref[...] = (xc * scale + b_ref[...].astype(jnp.float32)).astype(o_ref.dtype)

    return kernel


def layer_norm_pallas(x, gamma, beta):
    """LayerNorm over the last dim of x (any leading shape), Pallas kernel."""
    orig_shape = x.shape
    dim = int(orig_shape[-1])
    rows = _prod(orig_shape[:-1])
    dim_pad = _round_up(dim, LANE)

    x2 = x.reshape(rows, dim)
    g2 = gamma.reshape(1, dim)
    b2 = beta.reshape(1, dim)
    if dim_pad != dim:
        # pad the feature axis once -> full-width vst instead of per-tile vst.msk
        x2 = jnp.pad(x2, ((0, 0), (0, dim_pad - dim)))
        g2 = jnp.pad(g2, ((0, 0), (0, dim_pad - dim)))
        b2 = jnp.pad(b2, ((0, 0), (0, dim_pad - dim)))

    limit, budget = _vmem_limits()
    ib = x.dtype.itemsize
    pack = _sublane_pack(ib)
    # dbl-buffered input + dbl-buffered output + ~2 f32 temps per element
    per_row = dim_pad * (2 * ib + 2 * ib + 8)
    tile_rows = _choose_tile_rows(rows, per_row, budget, pack)
    grid = (pl.cdiv(rows, tile_rows),)

    out = pl.pallas_call(
        _make_ln_kernel(dim, dim_pad),
        out_shape=jax.ShapeDtypeStruct((rows, dim_pad), x.dtype),
        grid_spec=pltpu.PrefetchScalarGridSpec(
            num_scalar_prefetch=0,
            grid=grid,
            in_specs=[
                pl.BlockSpec((tile_rows, dim_pad), lambda i: (i, 0)),
                _invariant_spec((1, dim_pad), lambda i: (0, 0)),
                _invariant_spec((1, dim_pad), lambda i: (0, 0)),
            ],
            out_specs=pl.BlockSpec((tile_rows, dim_pad), lambda i: (i, 0)),
        ),
        compiler_params=pltpu.CompilerParams(
            dimension_semantics=("parallel",),
            vmem_limit_bytes=limit,
        ),
    )(x2, g2, b2)

    if dim_pad != dim:
        out = out[:, :dim]
    return out.reshape(orig_shape)


# --------------------------------------------------------------------------
# fused LayerNorm + Linear kernel (when `fn` is a Linear(dim -> dim_out))
# --------------------------------------------------------------------------
def _make_fused_kernel(dim_valid, dim_pad):
    inv_n = 1.0 / float(dim_valid)
    need_mask = dim_valid != dim_pad

    def kernel(x_ref, w_ref, b_ref, o_ref, y_ref):
        # Normalized rows are computed once per row tile (first dim_out tile)
        # and cached in a bf16 VMEM scratch, then reused across the n-axis.
        @pl.when(pl.program_id(1) == 0)
        def _():
            x = x_ref[...].astype(jnp.float32)
            if need_mask:
                col = jax.lax.broadcasted_iota(jnp.int32, x.shape, 1)
                m = (col < dim_valid).astype(jnp.float32)
                x = x * m
            mean = jnp.sum(x, axis=-1, keepdims=True) * inv_n
            xc = x - mean
            if need_mask:
                xc = xc * m
            var = jnp.sum(xc * xc, axis=-1, keepdims=True) * inv_n
            inv = jax.lax.rsqrt(var + EPS)
            # gamma is folded into W, beta into the bias -> y is just xc * inv
            y_ref[...] = (xc * inv).astype(y_ref.dtype)

        # native bf16 MXU matmul with f32 accumulation
        out = jnp.dot(y_ref[...], w_ref[...], preferred_element_type=jnp.float32)
        o_ref[...] = (out + b_ref[...].astype(jnp.float32)).astype(o_ref.dtype)

    return kernel


def layer_norm_linear_pallas(x, gamma, beta, w, b_lin):
    """Fused LayerNorm(last dim) followed by y @ w + b_lin (gamma/beta folded in)."""
    orig_shape = x.shape
    dim = int(orig_shape[-1])
    dim_out = int(w.shape[-1])
    rows = _prod(orig_shape[:-1])
    dim_pad = _round_up(dim, LANE)
    dim_out_pad = _round_up(dim_out, LANE)

    # Fold LN affine params into the linear layer (trace time, f32):
    #   (xc*inv*gamma + beta) @ W + b  ==  (xc*inv) @ (gamma[:,None]*W) + (beta@W + b)
    w_f = gamma.astype(jnp.float32)[:, None] * w.astype(jnp.float32)
    b_f = beta.astype(jnp.float32) @ w.astype(jnp.float32) + b_lin.astype(jnp.float32)

    x2 = x.reshape(rows, dim)
    if dim_pad != dim:
        x2 = jnp.pad(x2, ((0, 0), (0, dim_pad - dim)))
        w_f = jnp.pad(w_f, ((0, dim_pad - dim), (0, 0)))
    if dim_out_pad != dim_out:
        w_f = jnp.pad(w_f, ((0, 0), (0, dim_out_pad - dim_out)))
        b_f = jnp.pad(b_f, (0, dim_out_pad - dim_out))
    w_bf = w_f.astype(jnp.bfloat16)          # half the weight DMA/VMEM, native MXU dtype
    b2 = b_f.reshape(1, dim_out_pad)

    limit, budget = _vmem_limits()
    ib = x.dtype.itemsize
    pack = _sublane_pack(ib)

    # N-tiling of the weight: keep it fully resident only if small vs. VMEM,
    # otherwise block it over dim_out so v7x's 64 MiB is never exceeded.
    w_full_bytes = dim_pad * dim_out_pad * 2              # bf16
    if w_full_bytes <= budget // 4:
        tn = dim_out_pad
    else:
        tn = max(LANE, ((budget // 3) // (2 * dim_pad * 2)) // LANE * LANE)
        tn = min(tn, dim_out_pad)
    n_tiles = int(pl.cdiv(dim_out_pad, tn))

    w_bufs = 1 if (n_tiles == 1 and _buffered1_supported()) else 2
    w_block_bytes = dim_pad * tn * 2 * w_bufs
    # per-row VMEM: dbl-buffered x + bf16 y scratch + ~2 f32 temps + dbl-buffered out tile
    per_row = dim_pad * (2 * ib + 2 + 8) + tn * 2 * ib
    tile_rows = _choose_tile_rows(rows, per_row, budget - w_block_bytes, pack)
    grid = (pl.cdiv(rows, tile_rows), n_tiles)

    if n_tiles == 1:
        w_spec = _invariant_spec((dim_pad, tn), lambda i, j: (0, j))
        b_spec = _invariant_spec((1, tn), lambda i, j: (0, j))
    else:
        w_spec = pl.BlockSpec((dim_pad, tn), lambda i, j: (0, j))
        b_spec = pl.BlockSpec((1, tn), lambda i, j: (0, j))

    out = pl.pallas_call(
        _make_fused_kernel(dim, dim_pad),
        out_shape=jax.ShapeDtypeStruct((rows, dim_out_pad), x.dtype),
        grid_spec=pltpu.PrefetchScalarGridSpec(
            num_scalar_prefetch=0,
            grid=grid,
            in_specs=[
                pl.BlockSpec((tile_rows, dim_pad), lambda i, j: (i, 0)),
                w_spec,
                b_spec,
            ],
            out_specs=pl.BlockSpec((tile_rows, tn), lambda i, j: (i, j)),
            scratch_shapes=[pltpu.VMEM((tile_rows, dim_pad), jnp.bfloat16)],
        ),
        compiler_params=pltpu.CompilerParams(
            dimension_semantics=("parallel", "arbitrary"),
            vmem_limit_bytes=limit,
        ),
    )(x2, w_bf, b2)

    if dim_out_pad != dim_out:
        out = out[:, :dim_out]
    return out.reshape(orig_shape[:-1] + (dim_out,))


# --------------------------------------------------------------------------
# module mirror
# --------------------------------------------------------------------------
class Linear:
    """Tiny deterministic stand-in for the user-supplied wrapped module."""

    def __init__(self, w, b):
        self.w = w
        self.b = b

    def __call__(self, y):
        return y @ self.w + self.b


class LayerNormalize:
    """JAX mirror of the PyTorch wrapper: fn(LayerNorm(dim)(x), **kwargs)."""

    def __init__(self, dim, fn):
        # nn.LayerNorm default init: weight=1, bias=0
        self.gamma = jnp.ones((dim,), dtype=jnp.float32)
        self.beta = jnp.zeros((dim,), dtype=jnp.float32)
        self.fn = fn

    def __call__(self, x, **kwargs):
        # TODO(synk): only a plain Linear `fn` is fused into the kernel; any
        # other user-supplied fn runs as regular JAX after the LN kernel.
        if isinstance(self.fn, Linear) and not kwargs:
            return layer_norm_linear_pallas(x, self.gamma, self.beta,
                                            self.fn.w, self.fn.b)
        return self.fn(layer_norm_pallas(x, self.gamma, self.beta), **kwargs)


if __name__ == "__main__":
    key = jax.random.PRNGKey(0)
    # dim = 128 keeps the feature axis lane-dense (full-width vector stores).
    batch, seq, dim = 2, 8, 128
    kx, kw, kb = jax.random.split(key, 3)
    x = jax.random.normal(kx, (batch, seq, dim), dtype=jnp.float32)

    # deterministic wrapped fn: Linear(dim -> dim)
    w = (jax.random.normal(kw, (dim, dim), dtype=jnp.float32)
         / jnp.sqrt(jnp.float32(dim)))
    b = jax.random.normal(kb, (dim,), dtype=jnp.float32) * 0.01

    module = LayerNormalize(dim, Linear(w, b))

    # fused LN + Linear path (bf16 MXU matmul)
    out = jax.block_until_ready(module(x))

    # also exercise the general (unfused) LN kernel
    ln_only = jax.block_until_ready(layer_norm_pallas(x, module.gamma, module.beta))

    # pure-JAX reference
    mean = jnp.mean(x, axis=-1, keepdims=True)
    var = jnp.mean((x - mean) ** 2, axis=-1, keepdims=True)
    ln_ref = (x - mean) * jax.lax.rsqrt(var + EPS) * module.gamma + module.beta
    ref = ln_ref @ w + b

    assert out.shape == (batch, seq, dim)
    assert jnp.max(jnp.abs(ln_only - ln_ref)) < 1e-4
    assert jnp.max(jnp.abs(out - ref)) < 5e-2   # bf16 MXU matmul tolerance
    print("KERNEL_OK")
</pallas_src>

<mosaic_0001>
module attributes {stable_mosaic.version = 11 : i64} {
  func.func @_k(%arg0: i32, %arg1: memref<8x128xf32, #tpu.memory_space<vmem>>, %arg2: memref<8x128xf32, #tpu.memory_space<vmem>>) attributes {dimension_semantics = [#tpu.dimension_semantics<arbitrary>], iteration_bounds = array<i64: 1>, scalar_prefetch = 0 : i64, scratch_operands = 0 : i64, tpu.core_type = #tpu.core_type<tc>, window_params = [{pipeline_mode = #tpu.pipeline_mode<synchronous>, transform_indices = @transform_0, window_bounds = array<i64: 8, 128>}, {pipeline_mode = #tpu.pipeline_mode<synchronous>, transform_indices = @transform_1, window_bounds = array<i64: 8, 128>}]} {
    %c0 = arith.constant 0 : index
    %c0_0 = arith.constant 0 : index
    %0 = vector.load %arg1[%c0, %c0_0] : memref<8x128xf32, #tpu.memory_space<vmem>>, vector<8x128xf32>
    %c0_1 = arith.constant 0 : index
    %c0_2 = arith.constant 0 : index
    %1 = vector.load %arg2[%c0_1, %c0_2] : memref<8x128xf32, #tpu.memory_space<vmem>>, vector<8x128xf32>
    tpu.vector_store %arg2[%c0_1, %c0_2], %0 {strides = array<i32>} : memref<8x128xf32, #tpu.memory_space<vmem>>, vector<8x128xf32>,
    return
  }
  func.func @transform_0(%arg0: i32) -> (i32, i32) {
    %c0_i32 = arith.constant 0 : i32
    %c0_i32_0 = arith.constant 0 : i32
    %c0_i32_1 = arith.constant 0 : i32
    return %c0_i32, %c0_i32_0 : i32, i32
  }
  func.func @transform_1(%arg0: i32) -> (i32, i32) {
    %c0_i32 = arith.constant 0 : i32
    %c0_i32_0 = arith.constant 0 : i32
    %c0_i32_1 = arith.constant 0 : i32
    return %c0_i32, %c0_i32_0 : i32, i32
  }
}

module attributes {stable_mosaic.version = 11 : i64} {
  func.func @kernel(%arg0: i32, %arg1: i32, %arg2: memref<8x128xf32, #tpu.memory_space<vmem>>, %arg3: memref<128x128xbf16, #tpu.memory_space<vmem>>, %arg4: memref<1x128xf32, #tpu.memory_space<vmem>>, %arg5: memref<8x128xf32, #tpu.memory_space<vmem>>, %arg6: memref<8x128xbf16, #tpu.memory_space<vmem>>) attributes {dimension_semantics = [#tpu.dimension_semantics<parallel>, #tpu.dimension_semantics<arbitrary>], iteration_bounds = array<i64: 2, 1>, scalar_prefetch = 0 : i64, scratch_operands = 1 : i64, tpu.core_type = #tpu.core_type<tc>, window_params = [{transform_indices = @transform_0, window_bounds = array<i64: 8, 128>}, {transform_indices = @transform_1, window_bounds = array<i64: 128, 128>}, {transform_indices = @transform_2, window_bounds = array<i64: 1, 128>}, {transform_indices = @transform_3, window_bounds = array<i64: 8, 128>}]} {
    %c0_i32 = arith.constant 0 : i32
    %0 = arith.cmpi eq, %arg1, %c0_i32 : i32
    %1 = arith.extui %0 : i1 to i32
    %c0_i32_0 = arith.constant 0 : i32
    %2 = arith.cmpi ne, %1, %c0_i32_0 : i32
    scf.if %2 {
      %c0_8 = arith.constant 0 : index
      %c0_9 = arith.constant 0 : index
      %10 = vector.load %arg2[%c0_8, %c0_9] : memref<8x128xf32, #tpu.memory_space<vmem>>, vector<8x128xf32>
      %cst_10 = arith.constant dense<0.000000e+00> : vector<8xf32>
      %11 = vector.multi_reduction <add>, %10, %cst_10 [1] : vector<8x128xf32> to vector<8xf32>
      %12 = vector.shape_cast %11 : vector<8xf32> to vector<8x1xf32>
      %cst_11 = arith.constant 7.812500e-03 : f32
      %13 = vector.broadcast %cst_11 : f32 to vector<8x1xf32>
      %14 = arith.mulf %12, %13 : vector<8x1xf32>
      %15 = vector.broadcast %14 : vector<8x1xf32> to vector<8x128xf32>
      %16 = arith.subf %10, %15 : vector<8x128xf32>
      %17 = arith.mulf %16, %16 : vector<8x128xf32>
      %cst_12 = arith.constant dense<0.000000e+00> : vector<8xf32>
      %18 = vector.multi_reduction <add>, %17, %cst_12 [1] : vector<8x128xf32> to vector<8xf32>
      %19 = vector.shape_cast %18 : vector<8xf32> to vector<8x1xf32>
      %cst_13 = arith.constant 7.812500e-03 : f32
      %20 = vector.broadcast %cst_13 : f32 to vector<8x1xf32>
      %21 = arith.mulf %19, %20 : vector<8x1xf32>
      %cst_14 = arith.constant 9.99999974E-6 : f32
      %22 = vector.broadcast %cst_14 : f32 to vector<8x1xf32>
      %23 = arith.addf %21, %22 : vector<8x1xf32>
      %24 = math.rsqrt %23 : vector<8x1xf32>
      %25 = vector.broadcast %24 : vector<8x1xf32> to vector<8x128xf32>
      %26 = arith.mulf %16, %25 : vector<8x128xf32>
      %27 = arith.truncf %26 : vector<8x128xf32> to vector<8x128xbf16>
      %c0_15 = arith.constant 0 : index
      %c0_16 = arith.constant 0 : index
      %28 = vector.load %arg6[%c0_15, %c0_16] : memref<8x128xbf16, #tpu.memory_space<vmem>>, vector<8x128xbf16>
      tpu.vector_store %arg6[%c0_15, %c0_16], %27 {strides = array<i32>} : memref<8x128xbf16, #tpu.memory_space<vmem>>, vector<8x128xbf16>,
    } else {
    }
    %c0 = arith.constant 0 : index
    %c0_1 = arith.constant 0 : index
    %3 = vector.load %arg6[%c0, %c0_1] : memref<8x128xbf16, #tpu.memory_space<vmem>>, vector<8x128xbf16>
    %c0_2 = arith.constant 0 : index
    %c0_3 = arith.constant 0 : index
    %4 = vector.load %arg3[%c0_2, %c0_3] : memref<128x128xbf16, #tpu.memory_space<vmem>>, vector<128x128xbf16>
    %cst = arith.constant dense<0.000000e+00> : vector<8x128xf32>
    %5 = tpu.matmul %3, %4, %cst {dimension_numbers = #tpu.dot_dimension_numbers<[1], [0], [0], [1], [0, 0, 1, 1], [], []>} : vector<8x128xbf16>, vector<128x128xbf16>, vector<8x128xf32> -> vector<8x128xf32>
    %c0_4 = arith.constant 0 : index
    %c0_5 = arith.constant 0 : index
    %6 = vector.load %arg4[%c0_4, %c0_5] : memref<1x128xf32, #tpu.memory_space<vmem>>, vector<1x128xf32>
    %7 = vector.broadcast %6 : vector<1x128xf32> to vector<8x128xf32>
    %8 = arith.addf %5, %7 : vector<8x128xf32>
    %c0_6 = arith.constant 0 : index
    %c0_7 = arith.constant 0 : index
    %9 = vector.load %arg5[%c0_6, %c0_7] : memref<8x128xf32, #tpu.memory_space<vmem>>, vector<8x128xf32>
    tpu.vector_store %arg5[%c0_6, %c0_7], %8 {strides = array<i32>} : memref<8x128xf32, #tpu.memory_space<vmem>>, vector<8x128xf32>,
    return
  }
  func.func @transform_0(%arg0: i32, %arg1: i32) -> (i32, i32) {
    %c0_i32 = arith.constant 0 : i32
    %c0_i32_0 = arith.constant 0 : i32
    return %arg0, %c0_i32 : i32, i32
  }
  func.func @transform_1(%arg0: i32, %arg1: i32) -> (i32, i32) {
    %c0_i32 = arith.constant 0 : i32
    %c0_i32_0 = arith.constant 0 : i32
    return %c0_i32, %arg1 : i32, i32
  }
  func.func @transform_2(%arg0: i32, %arg1: i32) -> (i32, i32) {
    %c0_i32 = arith.constant 0 : i32
    %c0_i32_0 = arith.constant 0 : i32
    return %c0_i32, %arg1 : i32, i32
  }
  func.func @transform_3(%arg0: i32, %arg1: i32) -> (i32, i32) {
    %c0_i32 = arith.constant 0 : i32
    return %arg0, %arg1 : i32, i32
  }
}

</mosaic_0001>

<bundles_post_ra>
// kernel: tpu_custom_call.1
= control target key start
LH: loop header
LB: loop body
LE: loop exit
PB: predicated region body
PF: predicated region fallthrough
CT: control target
= control target key end

     0   :  { %6 = vsyncpa [#allocation3], 0  ;;  %s124_s0 = inlined_call_operand.hbm [shape: f32[8,128], index: 0, kind: input, shape index: {}]   ;;  %s125_s1 = inlined_call_operand.hbm [shape: f32[8,128], index: 1, kind: output, shape index: {}]  }
   0x1   :  { %7 = vsyncpa [#allocation4], 0  ;;  %s88_s6 = smov [#allocation2]   ;;  %s40_s10 = scalar_lea.hbm %s124_s0, 128 }
   0x2   :  { %s14_s7 = sshll.u32 %s88_s6, 4  ;;  %p41_p0 = scmp.ne.s32.totalorder %s124_s0, %s40_s10  ;;  %s15_s7 = int_to_ptr.vmem [resolvable:$true] %s14_s7 }
   0x3   :  { %p44_p1 = scmp.lt.u32.totalorder %s40_s10, %s124_s0 }
   0x5   :  { %p46_p2 = pnand %p44_p1, %p41_p0 }
   0x7   :  { %49 = shalt.err (!%p46_p2)
}
   0x8   :  { %s50_s15 = scalar_lea.vmem %s15_s7, 128  ;;  %p55_p4 = scmp.lt.s32.totalorder %s15_s7, %s15_s7 }
   0x9   :  { %p51_p3 = scmp.ne.s32.totalorder %s15_s7, %s50_s15  ;;  %p56_p5 = scmp.lt.s32.totalorder %s50_s15, %s50_s15 }
   0xb   :  { %p57_p6 = por %p56_p5, %p55_p4 }
   0xd   :  { %p58_p7 = pnand %p57_p6, %p51_p3 }
   0xf   :  { %61 = shalt.err (!%p58_p7)
}
  0x10   :  { %17 = dma.hbm_to_vmem [thread:$0]  %s124_s0, 128, %s15_s7, [#allocation3]  }
  0x11   :  { %84 = dma.done.wait [#allocation3], 128  }
  0x12   :  { %85 = vsyncadd [#allocation3], 4294967168  ;;  %s89_s18 = smov [#allocation5]   ;;  %v21_v0 = vld [vmem:[#allocation2] sm:$0xff] }
  0x13   :  { %s29_s19 = sshll.u32 %s89_s18, 4  ;;  %22 = vst [vmem:[#allocation5] sm:$0xff] %v21_v0  ;;  %s30_s19 = int_to_ptr.vmem [resolvable:$true] %s29_s19 }
  0x14   :  { %s62_s20 = scalar_lea.vmem %s30_s19, 128  ;;  %p67_p9 = scmp.lt.s32.totalorder %s30_s19, %s30_s19 }
  0x15   :  { %p63_p8 = scmp.ne.s32.totalorder %s30_s19, %s62_s20  ;;  %p68_p10 = scmp.lt.s32.totalorder %s62_s20, %s62_s20 }
  0x17   :  { %p69_p11 = por %p68_p10, %p67_p9 }
  0x19   :  { %p70_p12 = pnand %p69_p11, %p63_p8 }
  0x1b   :  { %73 = shalt.err (!%p70_p12)
}
  0x1c   :  { %s74_s23 = scalar_lea.hbm %s125_s1, 128 }
  0x1d   :  { %p75_p13 = scmp.ne.s32.totalorder %s125_s1, %s74_s23  ;;  %p78_p0 = scmp.lt.u32.totalorder %s74_s23, %s125_s1 }
  0x1f   :  { %p80_p1 = pnand %p78_p0, %p75_p13 }
  0x21   :  { %83 = shalt.err (!%p80_p1)
}
  0x22   :  { %32 = dma.vmem_to_hbm [thread:$0]  %s30_s19, 128, %s125_s1, [#allocation4]  }
  0x23   :  { %86 = dma.done.wait [#allocation4], 128  }
  0x24   :  { %87 = vsyncadd [#allocation4], 4294967168 }
  0x25   :  { %36 = vsyncpa [#allocation3], 1 }
  0x26   :  { %37 = vsyncpa [#allocation4], 1 }

// kernel: tpu_custom_call.1
= control target key start
LH: loop header
LB: loop body
LE: loop exit
PB: predicated region body
PF: predicated region fallthrough
CT: control target
= control target key end

     0   :  { %8 = vsyncpa [#allocation4], 0  ;;  %s1099_s0 = inlined_call_operand.hbm [shape: f32[16,128], index: 0, kind: input, shape index: {}]   ;;  %s1100_s1 = inlined_call_operand.hbm [shape: bf16[128,128], index: 1, kind: input, shape index: {}]   ;;  %s1101_s2 = inlined_call_operand.hbm [shape: f32[1,128], index: 2, kind: input, shape index: {}]   ;;  %s1102_s3 = inlined_call_operand.hbm [shape: f32[16,128], index: 3, kind: output, shape index: {}]  }
   0x1   :  { %10 = vsyncpa [#allocation4 + $0x1], 0 }
   0x2   :  { %11 = vsyncpa [#allocation7], 0 }
   0x3   :  { %12 = vsyncpa [#allocation5], 0 }
   0x4   :  { %14 = vsyncpa [#allocation5 + $0x1], 0  ;;  %s844_s12 = smov 0   ;;  %s846_s13 = smov 0  }
   0x5   :  { %s848_s14 = smov 0   ;;  %s850_s15 = smov 0  }
   0x6   :  { %s852_s16 = smov 0   ;;  %s854_s17 = smov 0  }
   0x7 LB: > { %s490_s18 = sadd.s32 4294967295, %s814_s17   ;;  %s491_s19 = sadd.s32 4294967294, %s814_s17   ;;  %s814_s17 = sphi %s854_s17, %s20_s17   ;;  %s810_s16 = sphi %s852_s16, %s1124_s16   ;;  %s806_s15 = sphi %s850_s15, %s1123_s15   ;;  %s802_s14 = sphi %s848_s14, %s1122_s14   ;;  %s798_s13 = sphi %s846_s13, %s1121_s13   ;;  %s794_s12 = sphi %s844_s12, %s1120_s12  }
   0x8   : > { %p52_p0 = scmp.ne.s32.totalorder %s798_s13, %s794_s12  ;;  %p878_p1 = scmp.eq.s32.totalorder %s490_s18, 0 }
   0x9   : > { %p882_p2 = scmp.eq.s32.totalorder %s490_s18, 1  ;;  %p136_p3 = scmp.eq.s32.totalorder %s491_s19, 1 }
   0xa   : > { %s1107_s20 = scalar_select %p878_p1, 1, 0 }
   0xb   : > { %p888_p4 = por %p878_p1, %p52_p0  ;;  %p492_p5 = scmp.ge.s32.totalorder %s814_s17, 1 }
   0xc   : > { %p893_p6 = por %p136_p3, %p52_p0  ;;  %p143_p7 = scmp.lt.s32.totalorder %s814_s17, 3 }
   0xd   : > { %s1109_s22 = scalar_select %p888_p4, 1, 0 }
   0xe   : > { %s1110_s23 = scalar_select %p893_p6, 1, 0 }
   0xf   : > { %p898_p8 = pnand %p492_p5, %p143_p7  ;;  %s816_s25 = smov [#allocation6]  }
  0x10   : > { %s157_s26 = sshll.u32 %s816_s25, 4  ;;  %s817_s28 = smov [#allocation8]   ;;  %s902_s26 = int_to_ptr.vmem [resolvable:$true] %s157_s26 }
  0x11   : > { %p557_p9 = pneg %p898_p8  ;;  %s173_s29 = sshll.u32 %s817_s28, 4  ;;  %s913_s29 = int_to_ptr.vmem [resolvable:$true] %s173_s29 }
  0x12   : > { %s642_s5 = scalar_lea.hbm %s1100_s1, 1024 }
  0x13   : > { %p909_p11 = pnand %p557_p9, %p878_p1  ;;  %p643_p12 = scmp.ne.s32.totalorder %s1100_s1, %s642_s5 }
  0x14   : > { %p649_p5 = scmp.lt.u32.totalorder %s642_s5, %s1100_s1 }
  0x15   : > { %p644_p13 = pneg %p909_p11 }
  0x17   : > { %p645_p0 = pnand %p644_p13, %p643_p12 }
  0x19   : > { %p646_p3 = pneg %p645_p0 }
  0x1b   : > { %p651_p7 = pnand %p649_p5, %p646_p3 }
  0x1d   : > { %654 = shalt.err (!%p651_p7)
}
  0x1e   : > { %s655_s10 = scalar_lea.vmem %s902_s26, 1024  ;;  %p663_p1 = scmp.lt.s32.totalorder %s902_s26, %s902_s26 }
  0x1f   : > { %p656_p9 = scmp.ne.s32.totalorder %s902_s26, %s655_s10  ;;  %p664_p12 = scmp.lt.s32.totalorder %s655_s10, %s655_s10 }
  0x21   : > { %p658_p10 = pnand %p656_p9, %p644_p13  ;;  %p665_p0 = por %p664_p12, %p663_p1 }
  0x23   : > { %p659_p6 = pneg %p658_p10 }
  0x25   : > { %p666_p4 = pnand %p665_p0, %p659_p6 }
  0x27   : > { %669 = shalt.err (!%p666_p4)
}
  0x28   : > { %s818_s11 = smov 64   ;;  %s819_s18 = smov 4  }
  0x29   : > { %560 = dma.hbm_to_vmem [thread:$0]  (!%p909_p11), %s1100_s1, 1024, %s902_s26, [#allocation7], %s818_s11, %s818_s11, %s819_s18  }
  0x2a   : > { %s670_s4 = scalar_lea.hbm %s1101_s2, 16 }
  0x2b   : > { %p671_p1 = scmp.ne.s32.totalorder %s1101_s2, %s670_s4  ;;  %p677_p10 = scmp.lt.u32.totalorder %s670_s4, %s1101_s2 }
  0x2d   : > { %p673_p4 = pnand %p671_p1, %p644_p13 }
  0x2f   : > { %p674_p6 = pneg %p673_p4 }
  0x31   : > { %p679_p3 = pnand %p677_p10, %p674_p6 }
  0x33   : > { %682 = shalt.err (!%p679_p3)
}
  0x34   : > { %s683_s26 = scalar_lea.vmem %s913_s29, 16  ;;  %s690_s9 = scalar_lea.vmem %s913_s29, 32 }
  0x35   : > { %p684_p5 = scmp.ne.s32.totalorder %s913_s29, %s683_s26  ;;  %p691_p12 = scmp.lt.s32.totalorder %s913_s29, %s913_s29 }
  0x36   : > { %p692_p0 = scmp.lt.s32.totalorder %s690_s9, %s683_s26 }
  0x37   : > { %p686_p7 = pnand %p684_p5, %p644_p13 }
  0x38   : > { %p693_p1 = por %p692_p0, %p691_p12 }
  0x39   : > { %p687_p9 = pneg %p686_p7 }
  0x3b   : > { %p694_p4 = pnand %p693_p1, %p687_p9 }
  0x3d   : > { %697 = shalt.err (!%p694_p4)
}
  0x3e   : > { %563 = dma.hbm_to_vmem [thread:$0]  (!%p909_p11), %s1101_s2, 16, %s913_s29, [#allocation7]  }
  0x3f   : > { %s32_s18 = sadd.s32 1, %s810_s16  ;;  %s39_s19 = sadd.s32 1, %s802_s14 }
  0x40   : > { %p34_p13 = scmp.ge.s32.totalorder %s32_s18, 2  ;;  %p46_p6 = scmp.ne.s32.totalorder %s802_s14, %s798_s13 }
  0x41   : > { %p47_p10 = scmp.eq.s32.totalorder %s814_s17, 0  ;;  %p574_p3 = scmp.lt.s32.totalorder %s814_s17, 2 }
  0x42   : > { %s1126_s18 = smov (%p34_p13, %s32_s18), 0  ;;  %p978_p7 = por %p882_p2, %p46_p6 }
  0x43   : > { %p48_p5 = por %p47_p10, %p46_p6  ;;  %s36_s25 = ssub.s32 %s810_s16, %s1126_s18 }
  0x44   : > { %s1113_s27 = scalar_select %p978_p7, 1, 0 }
  0x45   : > { %s184_s28 = sand.u32 1, %s802_s14   ;;  %p37_p9 = scmp.eq.s32.totalorder %s36_s25, 0 }
  0x46   : > { %s496_s29 = sshll.u32 %s184_s28, 3  ;;  %s497_s30 = sshll.u32 %s810_s16, 7 }
  0x47   : > { %s987_s4 = scalar_select %p37_p9, %s802_s14, %s39_s19  }
  0x48   : > { %s992_s7 = scalar_lea.hbm %s1099_s0, %s497_s30  ;;  %s188_s21 = scalar_lea.vmem [#allocation3], %s496_s29 }
  0x49   : > { %s195_s8 = sshll.u32 %s188_s21, 4  ;;  %p996_p2 = pnand %p574_p3, %p48_p5  ;;  %s1000_s8 = int_to_ptr.vmem [resolvable:$true] %s195_s8 }
  0x4a   : > { %s185_s9 = scalar_lea.sflag [#allocation4], %s184_s28  ;;  %s698_s10 = scalar_lea.hbm %s992_s7, 128 }
  0x4b   : > { %p699_p11 = scmp.ne.s32.totalorder %s992_s7, %s698_s10  ;;  %p700_p12 = pneg %p996_p2 }
  0x4c   : > { %s703_s25 = scalar_lea.hbm %s1099_s0, 256  ;;  %p704_p4 = scmp.lt.u32.totalorder %s992_s7, %s1099_s0 }
  0x4d   : > { %p701_p0 = pnand %p700_p12, %p699_p11  ;;  %p705_p13 = scmp.lt.u32.totalorder %s703_s25, %s698_s10 }
  0x4e   : > { %p707_p10 = scmp.lt.u32.totalorder %s698_s10, %s992_s7 }
  0x4f   : > { %p702_p1 = pneg %p701_p0  ;;  %p706_p6 = por %p705_p13, %p704_p4 }
  0x51   : > { %p708_p3 = por %p707_p10, %p706_p6 }
  0x53   : > { %p709_p5 = pnand %p708_p3, %p702_p1 }
  0x55   : > { %712 = shalt.err (!%p709_p5)
}
  0x56   : > { %s713_s28 = scalar_lea.vmem %s1000_s8, 128  ;;  %s820_s5 = smov [#allocation3]  }
  0x57   : > { %p714_p9 = scmp.ne.s32.totalorder %s1000_s8, %s713_s28  ;;  %s718_s6 = sshll.u32 %s820_s5, 4  ;;  %s719_s6 = int_to_ptr.vmem [resolvable:$false] %s718_s6 }
  0x58   : > { %s720_s21 = scalar_lea.vmem %s719_s6, 256  ;;  %p721_p7 = scmp.lt.s32.totalorder %s1000_s8, %s719_s6 }
  0x59   : > { %p716_p11 = pnand %p714_p9, %p700_p12  ;;  %p722_p4 = scmp.lt.s32.totalorder %s720_s21, %s713_s28 }
  0x5b   : > { %p717_p0 = pneg %p716_p11  ;;  %p723_p13 = por %p722_p4, %p721_p7 }
  0x5d   : > { %p724_p6 = pnand %p723_p13, %p717_p0 }
  0x5f   : > { %727 = shalt.err (!%p724_p6)
}
  0x60   : > { %567 = dma.hbm_to_vmem [thread:$0]  (!%p996_p2), %s992_s7, 128, %s1000_s8, %s185_s9  }
  0x61   : > { %204 = sbr.rel (%p898_p8) target bundleno = 654 (0x28e), region = 32  ;;  %s1030_s10 = sand.u32 (!%p898_p8), 1, %s798_s13  }
  0x62   : > { %s499_s11 = sshll.u32 (!%p898_p8), %s1030_s10, 3  ;;  %s207_s19 = scalar_lea.sflag (!%p898_p8), [#allocation4], %s1030_s10 }
  0x63   : > { %s210_s25 = scalar_lea.vmem (!%p898_p8), [#allocation3], %s499_s11  ;;  %p1115_p7 = scmp.ne.s32.totalorder (!%p898_p8), %s1109_s22, 0 }
  0x68   : > { %781 = dma.done.wait (%p1115_p7), %s207_s19, 128  }
  0x69   : > { %783 = vsyncadd (%p1115_p7), %s207_s19, 4294967168  ;;  %p1116_p2 = scmp.ne.s32.totalorder %s1107_s20, 0 }
  0x6b   : > { %785 = dma.done.wait (%p1116_p2), [#allocation7], 1040  }
  0x6c   : > { %787 = vsyncadd (%p1116_p2), [#allocation7], 4294966256  ;;  %v246_v0 = vld [vmem:[%s210_s25] sm:$0xff]  ;;  %v632_v1 = vld [vmem:[#allocation6] sm:$0xff]   ;;  %v821_v2 = vmov 0.0   ;;  %vm822_vm0 = vmmov 0  }
  0x6d   : > { %247 = vadd.xlane.f32.xlu0 %v246_v0  ;;  %525 = vmatprep.subr.bf16.mxu0 %v821_v2  ;;  %v633_v7 = vld [vmem:[#allocation6 + $0x8] sm:$0xff]   ;;  %v634_v8 = vld [vmem:[#allocation6 + $0x10] sm:$0xff]   ;;  %v635_v9 = vld [vmem:[#allocation6 + $0x18] sm:$0xff]   ;;  %s513_s20 = sshll.u32 %s806_s15, 7  ;;  %s240_s22 = scalar_lea.vmem [#allocation9], %s499_s11 }
  0x6e   : > { %526 = vmatpush3.bf16.msra.mxu0 %v632_v1  ;;  %v636_v10 = vld [vmem:[#allocation6 + $0x20] sm:$0xff]   ;;  %v637_v11 = vld [vmem:[#allocation6 + $0x28] sm:$0xff]   ;;  %v638_v12 = vld [vmem:[#allocation6 + $0x30] sm:$0xff]   ;;  %541 = vmatprep.mubr.msk.bf16.mxu0 %vm822_vm0, %v821_v2  ;;  %s388_s24 = sshll.u32 %s240_s22, 4  ;;  %s1050_s26 = scalar_lea.hbm %s1102_s3, %s513_s20  ;;  %s1052_s24 = int_to_ptr.vmem [resolvable:$true] %s388_s24 }
  0x6f   : > { %527 = vmatprep.subr.bf16.mxu0 %v821_v2  ;;  %v639_v13 = vld [vmem:[#allocation6 + $0x38] sm:$0xff]   ;;  %v503_v21 = vld [vmem:[#allocation8] ss:$0 sm:$0xff]  ;;  %s374_s15 = scalar_lea.sflag [#allocation5], %s1030_s10  ;;  %s728_s9 = scalar_lea.vmem %s1052_s24, 128 }
  0x70   : > { %p729_p8 = scmp.ne.s32.totalorder %s1052_s24, %s728_s9  ;;  %p1117_p12 = scmp.ne.s32.totalorder %s1113_s27, 0 }
  0x71   : > { %s823_s29 = smov [#allocation9]  }
  0x72   : > { %528 = vmatpush3.bf16.msra.mxu0 %v633_v7  ;;  %p730_p1 = pnand %p729_p8, %p1117_p12  ;;  %s732_s30 = sshll.u32 %s823_s29, 4  ;;  %s733_s30 = int_to_ptr.vmem [resolvable:$false] %s732_s30 }
  0x73   : > { %529 = vmatprep.subr.bf16.mxu0 %v821_v2  ;;  %s734_s28 = scalar_lea.vmem %s733_s30, 256  ;;  %p735_p3 = scmp.lt.s32.totalorder %s1052_s24, %s733_s30 }
  0x74   : > { %p731_p10 = pneg %p730_p1  ;;  %p736_p5 = scmp.lt.s32.totalorder %s734_s28, %s728_s9 }
  0x76   : > { %530 = vmatpush3.bf16.msra.mxu0 %v634_v8  ;;  %p737_p9 = por %p736_p5, %p735_p3 }
  0x77   : > { %531 = vmatprep.subr.bf16.mxu0 %v821_v2 }
  0x78   : > { %p738_p11 = pnand %p737_p9, %p731_p10 }
  0x7a   : > { %532 = vmatpush3.bf16.msra.mxu0 %v635_v9 }
  0x7b   : > { %533 = vmatprep.subr.bf16.mxu0 %v821_v2 }
  0x7e   : > { %534 = vmatpush3.bf16.msra.mxu0 %v636_v10 }
  0x7f   : > { %535 = vmatprep.subr.bf16.mxu0 %v821_v2 }
  0x82   : > { %536 = vmatpush3.bf16.msra.mxu0 %v637_v11 }
  0x83   : > { %537 = vmatprep.subr.bf16.mxu0 %v821_v2 }
  0x86   : > { %538 = vmatpush3.bf16.msra.mxu0 %v638_v12 }
  0x87   : > { %539 = vmatprep.subr.bf16.mxu0 %v821_v2 }
  0x8a   : > { %540 = vmatpush3.bf16.msra.mxu0 %v639_v13 }
  0xfa   : > { %v248_v3 = vpop.xlane.xlu0 %247 }
  0xfb   : > { %v249_v4 = vmul.f32 0.0078125, %v248_v3 }
  0xfd   : > { %v250_v5 = vsub.f32 %v246_v0, %v249_v4 }
  0xff   : > { %v251_v6 = vmul.f32 %v250_v5, %v250_v5 }
 0x101   : > { %252 = vadd.xlane.f32.xlu0 %v251_v6 }
 0x18e   : > { %v253_v14 = vpop.xlane.xlu0 %252 }
 0x18f   : > { %v254_v15 = vmul.f32 0.0078125, %v253_v14 }
 0x191   : > { %v255_v16 = vadd.f32 1e-05, %v254_v15 }
 0x193   : > { %640 = vrsqrt.f32 %v255_v16 }
 0x19d   : > { %v641_v17 = vpop.eup %640 }
 0x19e   : > { %v257_v18 = vmul.f32 %v641_v17, %v250_v5 }
 0x1a0   : > { %v258_v19 = vpack.c.bf16 %v257_v18, %v257_v18 }
 0x1a2   : > { %259 = vst [vmem:[#allocation2] sm:$0xf] %v258_v19 }
 0x1a9   : > { %v260_v20 = vld [vmem:[#allocation2] sm:$0xf] }
 0x1aa   : > { %542 = vmatmul.mubr.bf16.vlgmr.msra.gmra.mrb[0].mxu0 %v260_v20 }
 0x27d   : > { %v366_v22 = vpop.f32.mrb[0].mxu0 }
 0x27e   : > { %v367_v23 = vadd.f32 %v503_v21, %v366_v22  ;;  %v543_v24 = vpop.f32.mrb[1].mxu0 }
 0x27f   : > { %v369_v25 = vpop.f32.mrb[2].mxu0 }
 0x280   : > { %372 = vst [vmem:[%s240_s22] sm:$0xff] %v367_v23  ;;  %v544_v26 = vpop.f32.mrb[3].mxu0 }
 0x281   : > { %741 = shalt.err (!%p738_p11)
}
 0x282   : > { %s742_s5 = scalar_lea.hbm %s1050_s26, 128  ;;  %s746_s10 = scalar_lea.hbm %s1102_s3, 256 }
 0x283   : > { %p743_p0 = scmp.ne.s32.totalorder %s1050_s26, %s742_s5  ;;  %p747_p6 = scmp.lt.u32.totalorder %s1050_s26, %s1102_s3 }
 0x284   : > { %p748_p7 = scmp.lt.u32.totalorder %s746_s10, %s742_s5  ;;  %p750_p8 = scmp.lt.u32.totalorder %s742_s5, %s1050_s26 }
 0x285   : > { %p744_p4 = pnand %p743_p0, %p1117_p12 }
 0x286   : > { %p749_p2 = por %p748_p7, %p747_p6 }
 0x287   : > { %p745_p13 = pneg %p744_p4 }
 0x288   : > { %p751_p1 = por %p750_p8, %p749_p2 }
 0x28a   : > { %p752_p10 = pnand %p751_p1, %p745_p13 }
 0x28c   : > { %755 = shalt.err (!%p752_p10)
}
 0x28d   : > { %555 = dma.vmem_to_hbm [thread:$0]  (%p1117_p12), %s1052_s24, 128, %s1050_s26, %s374_s15  }
 0x28e PF: > { %s400_s25 = sand.u32 1, %s794_s12   ;;  %p1118_p3 = scmp.ne.s32.totalorder %s1110_s23, 0 }
 0x28f   : > { %p1119_p5 = scmp.ge.s32.totalorder %s814_s17, 2  ;;  %s401_s20 = scalar_lea.sflag [#allocation5], %s400_s25 }
 0x291   : > { %p569_p9 = pnand %p1119_p5, %p1118_p3 }
 0x293   : > { %789 = dma.done.wait (!%p569_p9), %s401_s20, 128  }
 0x294   : > { %791 = vsyncadd (!%p569_p9), %s401_s20, 4294967168  ;;  %s20_s17 = sadd.s32 1, %s814_s17   ;;  %s1120_s12 = smov %s798_s13 }
 0x295   : > { %p17_p11 = scmp.ge.s32.totalorder %s20_s17, 4   ;;  %s1121_s13 = smov %s802_s14 }
 0x296   : > { %s1122_s14 = smov %s987_s4  ;;  %s1123_s15 = smov %s810_s16 }
 0x297   : > { %s1124_s16 = smov %s1126_s18  ;;  %19 = sbr.rel (!%p17_p11) target bundleno = 7 (0x7), region = 91 }
 0x29e   :  { %406 = vsyncpa [#allocation4], 1 }
 0x29f   :  { %408 = vsyncpa [#allocation4 + $0x1], 1 }
 0x2a0   :  { %409 = vsyncpa [#allocation7], 1 }
 0x2a1   :  { %410 = vsyncpa [#allocation5], 1 }
 0x2a2   :  { %412 = vsyncpa [#allocation5 + $0x1], 1 }

</bundles_post_ra>
